<compile_context>
chip_gen: v5e
topology: v5e:2x2
jax: 0.10.0
libtpu: 0.0.40
codegen_flags: <defaults>
</compile_context>

<pallas_src>
import functools
import math

import jax
import jax.numpy as jnp
from jax.experimental import pallas as pl
from jax.experimental.pallas import tpu as pltpu


def _mhsa_kernel(x_ref, wq_ref, wk_ref, wv_ref, wo_ref,
                 bq_ref, bk_ref, bv_ref, bo_ref,
                 out_ref, *, num_heads):
    x = x_ref[0].astype(jnp.float32)                       # (S, H)
    S, H = x.shape
    dh = H // num_heads
    scale = 1.0 / math.sqrt(dh)

    def linear(w_ref, b_ref):
        # w_ref already holds W^T, so this is x @ W^T + b (nn.Linear).
        return (jnp.dot(x, w_ref[...], preferred_element_type=jnp.float32)
                + b_ref[...])                              # (S, H)

    q = linear(wq_ref, bq_ref)
    k = linear(wk_ref, bk_ref)
    v = linear(wv_ref, bv_ref)

    head_outs = []
    for h in range(num_heads):                             # static unroll
        sl = slice(h * dh, (h + 1) * dh)
        qh, kh, vh = q[:, sl], k[:, sl], v[:, sl]          # (S, dh)
        # scores[q, k] = <Q_q, K_k> / sqrt(dh); softmax over the key axis
        # (== dim=-2 of the PyTorch 'bhkq' attention pattern).
        s = jnp.dot(qh, kh.T, preferred_element_type=jnp.float32) * scale  # (S, S)
        s = s - jnp.max(s, axis=-1, keepdims=True)
        p = jnp.exp(s)
        p = p / jnp.sum(p, axis=-1, keepdims=True)
        head_outs.append(jnp.dot(p, vh, preferred_element_type=jnp.float32))
    ctx = jnp.concatenate(head_outs, axis=-1)              # (S, H)

    out = (jnp.dot(ctx, wo_ref[...], preferred_element_type=jnp.float32)
           + bo_ref[...])
    out_ref[0] = out.astype(out_ref.dtype)


def mhsa_pallas(x, wq, bq, wk, bk, wv, bv, wo, bo, *, num_heads):
    B, S, H = x.shape
    assert H % num_heads == 0, "hidden_size must divide evenly into heads"

    # nn.Linear computes x @ W.T + b; pre-transpose once on the host so the
    # kernel does a plain row-major x @ W.
    wqt, wkt, wvt, wot = wq.T, wk.T, wv.T, wo.T
    bq2, bk2, bv2, bo2 = (b.reshape(1, H) for b in (bq, bk, bv, bo))

    kernel = functools.partial(_mhsa_kernel, num_heads=num_heads)

    out = pl.pallas_call(
        kernel,
        out_shape=jax.ShapeDtypeStruct((B, S, H), x.dtype),
        grid_spec=pltpu.PrefetchScalarGridSpec(
            num_scalar_prefetch=0,
            grid=(B,),
            in_specs=[
                pl.BlockSpec((1, S, H), lambda b: (b, 0, 0)),   # x
                pl.BlockSpec((H, H), lambda b: (0, 0)),         # Wq^T (resident)
                pl.BlockSpec((H, H), lambda b: (0, 0)),         # Wk^T
                pl.BlockSpec((H, H), lambda b: (0, 0)),         # Wv^T
                pl.BlockSpec((H, H), lambda b: (0, 0)),         # Wo^T
                pl.BlockSpec((1, H), lambda b: (0, 0)),         # bq
                pl.BlockSpec((1, H), lambda b: (0, 0)),         # bk
                pl.BlockSpec((1, H), lambda b: (0, 0)),         # bv
                pl.BlockSpec((1, H), lambda b: (0, 0)),         # bo
            ],
            out_specs=pl.BlockSpec((1, S, H), lambda b: (b, 0, 0)),
        ),
        compiler_params=pltpu.CompilerParams(
            dimension_semantics=("parallel",)),
    )(x, wqt, wkt, wvt, wot, bq2, bk2, bv2, bo2)
    return out


def mhsa_reference(x, wq, bq, wk, bk, wv, bv, wo, bo, *, num_heads):
    """Pure-JAX mirror of the PyTorch module (same einsum structure)."""
    B, S, H = x.shape
    dh = H // num_heads
    lin = lambda a, w, b: a @ w.T + b

    def split_heads(a):
        return a.reshape(B, S, num_heads, dh).transpose(0, 2, 1, 3)  # b h s d

    q = split_heads(lin(x, wq, bq))
    k = split_heads(lin(x, wk, bk))
    v = split_heads(lin(x, wv, bv))

    scores = jnp.einsum('bhqd,bhkd->bhkq', q, k) / math.sqrt(dh)
    attn = jax.nn.softmax(scores, axis=-2)                 # softmax over keys
    combined = jnp.einsum('bhkd,bhkq->bhqd', v, attn)
    ctx = combined.transpose(0, 2, 1, 3).reshape(B, S, H)
    return lin(ctx, wo, bo)


if __name__ == "__main__":
    # Small synthetic config implied by the module: B=2, S=8, H=32, 4 heads.
    num_heads = 4
    hidden_size = 32
    B, S = 2, 8

    key = jax.random.PRNGKey(0)
    keys = jax.random.split(key, 9)

    def w_init(k):
        return jax.random.normal(k, (hidden_size, hidden_size),
                                 jnp.float32) / math.sqrt(hidden_size)

    wq, wk, wv, wo = (w_init(keys[i]) for i in range(4))
    bq, bk, bv, bo = (0.1 * jax.random.normal(keys[4 + i], (hidden_size,),
                                              jnp.float32) for i in range(4))
    x = jax.random.normal(keys[8], (B, S, hidden_size), jnp.float32)

    out = mhsa_pallas(x, wq, bq, wk, bk, wv, bv, wo, bo, num_heads=num_heads)
    out = jax.block_until_ready(out)

    ref = mhsa_reference(x, wq, bq, wk, bk, wv, bv, wo, bo, num_heads=num_heads)
    assert out.shape == (B, S, hidden_size)
    assert jnp.allclose(out, ref, atol=1e-4, rtol=1e-4), "mismatch vs reference"

    print("KERNEL_OK")
</pallas_src>

<mosaic_0001>
module attributes {stable_mosaic.version = 11 : i64} {
  func.func @_mhsa_kernel(%arg0: i32, %arg1: memref<1x8x32xf32, #tpu.memory_space<vmem>>, %arg2: memref<32x32xf32, #tpu.memory_space<vmem>>, %arg3: memref<32x32xf32, #tpu.memory_space<vmem>>, %arg4: memref<32x32xf32, #tpu.memory_space<vmem>>, %arg5: memref<32x32xf32, #tpu.memory_space<vmem>>, %arg6: memref<1x32xf32, #tpu.memory_space<vmem>>, %arg7: memref<1x32xf32, #tpu.memory_space<vmem>>, %arg8: memref<1x32xf32, #tpu.memory_space<vmem>>, %arg9: memref<1x32xf32, #tpu.memory_space<vmem>>, %arg10: memref<1x8x32xf32, #tpu.memory_space<vmem>>) attributes {dimension_semantics = [#tpu.dimension_semantics<parallel>], iteration_bounds = array<i64: 2>, scalar_prefetch = 0 : i64, scratch_operands = 0 : i64, tpu.core_type = #tpu.core_type<tc>, window_params = [{transform_indices = @transform_0, window_bounds = array<i64: 1, 8, 32>}, {pipeline_mode = #tpu.pipeline_mode<synchronous>, transform_indices = @transform_1, window_bounds = array<i64: 32, 32>}, {pipeline_mode = #tpu.pipeline_mode<synchronous>, transform_indices = @transform_2, window_bounds = array<i64: 32, 32>}, {pipeline_mode = #tpu.pipeline_mode<synchronous>, transform_indices = @transform_3, window_bounds = array<i64: 32, 32>}, {pipeline_mode = #tpu.pipeline_mode<synchronous>, transform_indices = @transform_4, window_bounds = array<i64: 32, 32>}, {pipeline_mode = #tpu.pipeline_mode<synchronous>, transform_indices = @transform_5, window_bounds = array<i64: 1, 32>}, {pipeline_mode = #tpu.pipeline_mode<synchronous>, transform_indices = @transform_6, window_bounds = array<i64: 1, 32>}, {pipeline_mode = #tpu.pipeline_mode<synchronous>, transform_indices = @transform_7, window_bounds = array<i64: 1, 32>}, {pipeline_mode = #tpu.pipeline_mode<synchronous>, transform_indices = @transform_8, window_bounds = array<i64: 1, 32>}, {transform_indices = @transform_9, window_bounds = array<i64: 1, 8, 32>}]} {
    %c0 = arith.constant 0 : index
    %c0_0 = arith.constant 0 : index
    %c0_1 = arith.constant 0 : index
    %0 = vector.load %arg1[%c0, %c0_0, %c0_1] : memref<1x8x32xf32, #tpu.memory_space<vmem>>, vector<1x8x32xf32>
    %1 = vector.shape_cast %0 : vector<1x8x32xf32> to vector<8x32xf32>
    %c0_2 = arith.constant 0 : index
    %c0_3 = arith.constant 0 : index
    %2 = vector.load %arg2[%c0_2, %c0_3] : memref<32x32xf32, #tpu.memory_space<vmem>>, vector<32x32xf32>
    %cst = arith.constant dense<0.000000e+00> : vector<8x32xf32>
    %3 = tpu.matmul %1, %2, %cst {dimension_numbers = #tpu.dot_dimension_numbers<[1], [0], [0], [1], [0, 0, 1, 1], [], []>} : vector<8x32xf32>, vector<32x32xf32>, vector<8x32xf32> -> vector<8x32xf32>
    %c0_4 = arith.constant 0 : index
    %c0_5 = arith.constant 0 : index
    %4 = vector.load %arg6[%c0_4, %c0_5] : memref<1x32xf32, #tpu.memory_space<vmem>>, vector<1x32xf32>
    %5 = vector.broadcast %4 : vector<1x32xf32> to vector<8x32xf32>
    %6 = arith.addf %3, %5 : vector<8x32xf32>
    %c0_6 = arith.constant 0 : index
    %c0_7 = arith.constant 0 : index
    %7 = vector.load %arg3[%c0_6, %c0_7] : memref<32x32xf32, #tpu.memory_space<vmem>>, vector<32x32xf32>
    %cst_8 = arith.constant dense<0.000000e+00> : vector<8x32xf32>
    %8 = tpu.matmul %1, %7, %cst_8 {dimension_numbers = #tpu.dot_dimension_numbers<[1], [0], [0], [1], [0, 0, 1, 1], [], []>} : vector<8x32xf32>, vector<32x32xf32>, vector<8x32xf32> -> vector<8x32xf32>
    %c0_9 = arith.constant 0 : index
    %c0_10 = arith.constant 0 : index
    %9 = vector.load %arg7[%c0_9, %c0_10] : memref<1x32xf32, #tpu.memory_space<vmem>>, vector<1x32xf32>
    %10 = vector.broadcast %9 : vector<1x32xf32> to vector<8x32xf32>
    %11 = arith.addf %8, %10 : vector<8x32xf32>
    %c0_11 = arith.constant 0 : index
    %c0_12 = arith.constant 0 : index
    %12 = vector.load %arg4[%c0_11, %c0_12] : memref<32x32xf32, #tpu.memory_space<vmem>>, vector<32x32xf32>
    %cst_13 = arith.constant dense<0.000000e+00> : vector<8x32xf32>
    %13 = tpu.matmul %1, %12, %cst_13 {dimension_numbers = #tpu.dot_dimension_numbers<[1], [0], [0], [1], [0, 0, 1, 1], [], []>} : vector<8x32xf32>, vector<32x32xf32>, vector<8x32xf32> -> vector<8x32xf32>
    %c0_14 = arith.constant 0 : index
    %c0_15 = arith.constant 0 : index
    %14 = vector.load %arg8[%c0_14, %c0_15] : memref<1x32xf32, #tpu.memory_space<vmem>>, vector<1x32xf32>
    %15 = vector.broadcast %14 : vector<1x32xf32> to vector<8x32xf32>
    %16 = arith.addf %13, %15 : vector<8x32xf32>
    %17 = vector.extract_strided_slice %6 {offsets = [0, 0], sizes = [8, 8], strides = [1, 1]} : vector<8x32xf32> to vector<8x8xf32>
    %18 = vector.extract_strided_slice %11 {offsets = [0, 0], sizes = [8, 8], strides = [1, 1]} : vector<8x32xf32> to vector<8x8xf32>
    %19 = vector.extract_strided_slice %16 {offsets = [0, 0], sizes = [8, 8], strides = [1, 1]} : vector<8x32xf32> to vector<8x8xf32>
    %20 = tpu.transpose %18, [1, 0] : vector<8x8xf32> -> vector<8x8xf32>
    %cst_16 = arith.constant dense<0.000000e+00> : vector<8x8xf32>
    %21 = tpu.matmul %17, %20, %cst_16 {dimension_numbers = #tpu.dot_dimension_numbers<[1], [0], [0], [1], [0, 0, 1, 1], [], []>} : vector<8x8xf32>, vector<8x8xf32>, vector<8x8xf32> -> vector<8x8xf32>
    %cst_17 = arith.constant 0.353553385 : f32
    %22 = vector.broadcast %cst_17 : f32 to vector<8x8xf32>
    %23 = arith.mulf %21, %22 : vector<8x8xf32>
    %cst_18 = arith.constant dense<0xFF800000> : vector<8xf32>
    %24 = vector.multi_reduction <maximumf>, %23, %cst_18 [1] : vector<8x8xf32> to vector<8xf32>
    %25 = vector.shape_cast %24 : vector<8xf32> to vector<8x1xf32>
    %26 = vector.broadcast %25 : vector<8x1xf32> to vector<8x8xf32>
    %27 = arith.subf %23, %26 : vector<8x8xf32>
    %28 = math.exp %27 : vector<8x8xf32>
    %cst_19 = arith.constant dense<0.000000e+00> : vector<8xf32>
    %29 = vector.multi_reduction <add>, %28, %cst_19 [1] : vector<8x8xf32> to vector<8xf32>
    %30 = vector.shape_cast %29 : vector<8xf32> to vector<8x1xf32>
    %31 = vector.broadcast %30 : vector<8x1xf32> to vector<8x8xf32>
    %32 = arith.divf %28, %31 : vector<8x8xf32>
    %cst_20 = arith.constant dense<0.000000e+00> : vector<8x8xf32>
    %33 = tpu.matmul %32, %19, %cst_20 {dimension_numbers = #tpu.dot_dimension_numbers<[1], [0], [0], [1], [0, 0, 1, 1], [], []>} : vector<8x8xf32>, vector<8x8xf32>, vector<8x8xf32> -> vector<8x8xf32>
    %34 = vector.extract_strided_slice %6 {offsets = [0, 8], sizes = [8, 8], strides = [1, 1]} : vector<8x32xf32> to vector<8x8xf32>
    %35 = vector.extract_strided_slice %11 {offsets = [0, 8], sizes = [8, 8], strides = [1, 1]} : vector<8x32xf32> to vector<8x8xf32>
    %36 = vector.extract_strided_slice %16 {offsets = [0, 8], sizes = [8, 8], strides = [1, 1]} : vector<8x32xf32> to vector<8x8xf32>
    %37 = tpu.transpose %35, [1, 0] : vector<8x8xf32> -> vector<8x8xf32>
    %cst_21 = arith.constant dense<0.000000e+00> : vector<8x8xf32>
    %38 = tpu.matmul %34, %37, %cst_21 {dimension_numbers = #tpu.dot_dimension_numbers<[1], [0], [0], [1], [0, 0, 1, 1], [], []>} : vector<8x8xf32>, vector<8x8xf32>, vector<8x8xf32> -> vector<8x8xf32>
    %cst_22 = arith.constant 0.353553385 : f32
    %39 = vector.broadcast %cst_22 : f32 to vector<8x8xf32>
    %40 = arith.mulf %38, %39 : vector<8x8xf32>
    %cst_23 = arith.constant dense<0xFF800000> : vector<8xf32>
    %41 = vector.multi_reduction <maximumf>, %40, %cst_23 [1] : vector<8x8xf32> to vector<8xf32>
    %42 = vector.shape_cast %41 : vector<8xf32> to vector<8x1xf32>
    %43 = vector.broadcast %42 : vector<8x1xf32> to vector<8x8xf32>
    %44 = arith.subf %40, %43 : vector<8x8xf32>
    %45 = math.exp %44 : vector<8x8xf32>
    %cst_24 = arith.constant dense<0.000000e+00> : vector<8xf32>
    %46 = vector.multi_reduction <add>, %45, %cst_24 [1] : vector<8x8xf32> to vector<8xf32>
    %47 = vector.shape_cast %46 : vector<8xf32> to vector<8x1xf32>
    %48 = vector.broadcast %47 : vector<8x1xf32> to vector<8x8xf32>
    %49 = arith.divf %45, %48 : vector<8x8xf32>
    %cst_25 = arith.constant dense<0.000000e+00> : vector<8x8xf32>
    %50 = tpu.matmul %49, %36, %cst_25 {dimension_numbers = #tpu.dot_dimension_numbers<[1], [0], [0], [1], [0, 0, 1, 1], [], []>} : vector<8x8xf32>, vector<8x8xf32>, vector<8x8xf32> -> vector<8x8xf32>
    %51 = vector.extract_strided_slice %6 {offsets = [0, 16], sizes = [8, 8], strides = [1, 1]} : vector<8x32xf32> to vector<8x8xf32>
    %52 = vector.extract_strided_slice %11 {offsets = [0, 16], sizes = [8, 8], strides = [1, 1]} : vector<8x32xf32> to vector<8x8xf32>
    %53 = vector.extract_strided_slice %16 {offsets = [0, 16], sizes = [8, 8], strides = [1, 1]} : vector<8x32xf32> to vector<8x8xf32>
    %54 = tpu.transpose %52, [1, 0] : vector<8x8xf32> -> vector<8x8xf32>
    %cst_26 = arith.constant dense<0.000000e+00> : vector<8x8xf32>
    %55 = tpu.matmul %51, %54, %cst_26 {dimension_numbers = #tpu.dot_dimension_numbers<[1], [0], [0], [1], [0, 0, 1, 1], [], []>} : vector<8x8xf32>, vector<8x8xf32>, vector<8x8xf32> -> vector<8x8xf32>
    %cst_27 = arith.constant 0.353553385 : f32
    %56 = vector.broadcast %cst_27 : f32 to vector<8x8xf32>
    %57 = arith.mulf %55, %56 : vector<8x8xf32>
    %cst_28 = arith.constant dense<0xFF800000> : vector<8xf32>
    %58 = vector.multi_reduction <maximumf>, %57, %cst_28 [1] : vector<8x8xf32> to vector<8xf32>
    %59 = vector.shape_cast %58 : vector<8xf32> to vector<8x1xf32>
    %60 = vector.broadcast %59 : vector<8x1xf32> to vector<8x8xf32>
    %61 = arith.subf %57, %60 : vector<8x8xf32>
    %62 = math.exp %61 : vector<8x8xf32>
    %cst_29 = arith.constant dense<0.000000e+00> : vector<8xf32>
    %63 = vector.multi_reduction <add>, %62, %cst_29 [1] : vector<8x8xf32> to vector<8xf32>
    %64 = vector.shape_cast %63 : vector<8xf32> to vector<8x1xf32>
    %65 = vector.broadcast %64 : vector<8x1xf32> to vector<8x8xf32>
    %66 = arith.divf %62, %65 : vector<8x8xf32>
    %cst_30 = arith.constant dense<0.000000e+00> : vector<8x8xf32>
    %67 = tpu.matmul %66, %53, %cst_30 {dimension_numbers = #tpu.dot_dimension_numbers<[1], [0], [0], [1], [0, 0, 1, 1], [], []>} : vector<8x8xf32>, vector<8x8xf32>, vector<8x8xf32> -> vector<8x8xf32>
    %68 = vector.extract_strided_slice %6 {offsets = [0, 24], sizes = [8, 8], strides = [1, 1]} : vector<8x32xf32> to vector<8x8xf32>
    %69 = vector.extract_strided_slice %11 {offsets = [0, 24], sizes = [8, 8], strides = [1, 1]} : vector<8x32xf32> to vector<8x8xf32>
    %70 = vector.extract_strided_slice %16 {offsets = [0, 24], sizes = [8, 8], strides = [1, 1]} : vector<8x32xf32> to vector<8x8xf32>
    %71 = tpu.transpose %69, [1, 0] : vector<8x8xf32> -> vector<8x8xf32>
    %cst_31 = arith.constant dense<0.000000e+00> : vector<8x8xf32>
    %72 = tpu.matmul %68, %71, %cst_31 {dimension_numbers = #tpu.dot_dimension_numbers<[1], [0], [0], [1], [0, 0, 1, 1], [], []>} : vector<8x8xf32>, vector<8x8xf32>, vector<8x8xf32> -> vector<8x8xf32>
    %cst_32 = arith.constant 0.353553385 : f32
    %73 = vector.broadcast %cst_32 : f32 to vector<8x8xf32>
    %74 = arith.mulf %72, %73 : vector<8x8xf32>
    %cst_33 = arith.constant dense<0xFF800000> : vector<8xf32>
    %75 = vector.multi_reduction <maximumf>, %74, %cst_33 [1] : vector<8x8xf32> to vector<8xf32>
    %76 = vector.shape_cast %75 : vector<8xf32> to vector<8x1xf32>
    %77 = vector.broadcast %76 : vector<8x1xf32> to vector<8x8xf32>
    %78 = arith.subf %74, %77 : vector<8x8xf32>
    %79 = math.exp %78 : vector<8x8xf32>
    %cst_34 = arith.constant dense<0.000000e+00> : vector<8xf32>
    %80 = vector.multi_reduction <add>, %79, %cst_34 [1] : vector<8x8xf32> to vector<8xf32>
    %81 = vector.shape_cast %80 : vector<8xf32> to vector<8x1xf32>
    %82 = vector.broadcast %81 : vector<8x1xf32> to vector<8x8xf32>
    %83 = arith.divf %79, %82 : vector<8x8xf32>
    %cst_35 = arith.constant dense<0.000000e+00> : vector<8x8xf32>
    %84 = tpu.matmul %83, %70, %cst_35 {dimension_numbers = #tpu.dot_dimension_numbers<[1], [0], [0], [1], [0, 0, 1, 1], [], []>} : vector<8x8xf32>, vector<8x8xf32>, vector<8x8xf32> -> vector<8x8xf32>
    %85 = tpu.concatenate %33, %50, %67, %84 in 1 : vector<8x8xf32>, vector<8x8xf32>, vector<8x8xf32>, vector<8x8xf32> -> vector<8x32xf32>
    %c0_36 = arith.constant 0 : index
    %c0_37 = arith.constant 0 : index
    %86 = vector.load %arg5[%c0_36, %c0_37] : memref<32x32xf32, #tpu.memory_space<vmem>>, vector<32x32xf32>
    %cst_38 = arith.constant dense<0.000000e+00> : vector<8x32xf32>
    %87 = tpu.matmul %85, %86, %cst_38 {dimension_numbers = #tpu.dot_dimension_numbers<[1], [0], [0], [1], [0, 0, 1, 1], [], []>} : vector<8x32xf32>, vector<32x32xf32>, vector<8x32xf32> -> vector<8x32xf32>
    %c0_39 = arith.constant 0 : index
    %c0_40 = arith.constant 0 : index
    %88 = vector.load %arg9[%c0_39, %c0_40] : memref<1x32xf32, #tpu.memory_space<vmem>>, vector<1x32xf32>
    %89 = vector.broadcast %88 : vector<1x32xf32> to vector<8x32xf32>
    %90 = arith.addf %87, %89 : vector<8x32xf32>
    %c0_41 = arith.constant 0 : index
    %c0_42 = arith.constant 0 : index
    %c0_43 = arith.constant 0 : index
    %91 = vector.load %arg10[%c0_41, %c0_42, %c0_43] : memref<1x8x32xf32, #tpu.memory_space<vmem>>, vector<1x8x32xf32>
    %92 = vector.shape_cast %91 : vector<1x8x32xf32> to vector<8x32xf32>
    %93 = vector.shape_cast %90 : vector<8x32xf32> to vector<1x8x32xf32>
    tpu.vector_store %arg10[%c0_41, %c0_42, %c0_43], %93 {strides = array<i32>} : memref<1x8x32xf32, #tpu.memory_space<vmem>>, vector<1x8x32xf32>,
    return
  }
  func.func @transform_0(%arg0: i32) -> (i32, i32, i32) {
    %c0_i32 = arith.constant 0 : i32
    %c0_i32_0 = arith.constant 0 : i32
    %c0_i32_1 = arith.constant 0 : i32
    return %arg0, %c0_i32, %c0_i32_0 : i32, i32, i32
  }
  func.func @transform_1(%arg0: i32) -> (i32, i32) {
    %c0_i32 = arith.constant 0 : i32
    %c0_i32_0 = arith.constant 0 : i32
    %c0_i32_1 = arith.constant 0 : i32
    return %c0_i32, %c0_i32_0 : i32, i32
  }
  func.func @transform_2(%arg0: i32) -> (i32, i32) {
    %c0_i32 = arith.constant 0 : i32
    %c0_i32_0 = arith.constant 0 : i32
    %c0_i32_1 = arith.constant 0 : i32
    return %c0_i32, %c0_i32_0 : i32, i32
  }
  func.func @transform_3(%arg0: i32) -> (i32, i32) {
    %c0_i32 = arith.constant 0 : i32
    %c0_i32_0 = arith.constant 0 : i32
    %c0_i32_1 = arith.constant 0 : i32
    return %c0_i32, %c0_i32_0 : i32, i32
  }
  func.func @transform_4(%arg0: i32) -> (i32, i32) {
    %c0_i32 = arith.constant 0 : i32
    %c0_i32_0 = arith.constant 0 : i32
    %c0_i32_1 = arith.constant 0 : i32
    return %c0_i32, %c0_i32_0 : i32, i32
  }
  func.func @transform_5(%arg0: i32) -> (i32, i32) {
    %c0_i32 = arith.constant 0 : i32
    %c0_i32_0 = arith.constant 0 : i32
    %c0_i32_1 = arith.constant 0 : i32
    return %c0_i32, %c0_i32_0 : i32, i32
  }
  func.func @transform_6(%arg0: i32) -> (i32, i32) {
    %c0_i32 = arith.constant 0 : i32
    %c0_i32_0 = arith.constant 0 : i32
    %c0_i32_1 = arith.constant 0 : i32
    return %c0_i32, %c0_i32_0 : i32, i32
  }
  func.func @transform_7(%arg0: i32) -> (i32, i32) {
    %c0_i32 = arith.constant 0 : i32
    %c0_i32_0 = arith.constant 0 : i32
    %c0_i32_1 = arith.constant 0 : i32
    return %c0_i32, %c0_i32_0 : i32, i32
  }
  func.func @transform_8(%arg0: i32) -> (i32, i32) {
    %c0_i32 = arith.constant 0 : i32
    %c0_i32_0 = arith.constant 0 : i32
    %c0_i32_1 = arith.constant 0 : i32
    return %c0_i32, %c0_i32_0 : i32, i32
  }
  func.func @transform_9(%arg0: i32) -> (i32, i32, i32) {
    %c0_i32 = arith.constant 0 : i32
    %c0_i32_0 = arith.constant 0 : i32
    %c0_i32_1 = arith.constant 0 : i32
    return %arg0, %c0_i32, %c0_i32_0 : i32, i32, i32
  }
}

</mosaic_0001>

<bundles_post_ra>
// kernel: tpu_custom_call.1
= control target key start
LH: loop header
LB: loop body
LE: loop exit
PB: predicated region body
PF: predicated region fallthrough
CT: control target
= control target key end

     0   :  { %s1660_s0 = inlined_call_operand.hbm [shape: f32[2,8,32], index: 0, kind: input, shape index: {}]   ;;  %s1661_s1 = inlined_call_operand.hbm [shape: f32[32,32], index: 1, kind: input, shape index: {}]   ;;  %s1662_s2 = inlined_call_operand.hbm [shape: f32[32,32], index: 2, kind: input, shape index: {}]   ;;  %s1663_s3 = inlined_call_operand.hbm [shape: f32[32,32], index: 3, kind: input, shape index: {}]   ;;  %s1664_s4 = inlined_call_operand.hbm [shape: f32[32,32], index: 4, kind: input, shape index: {}]   ;;  %s1665_s5 = inlined_call_operand.vmem [shape: f32[1,32], index: 5, kind: input, shape index: {}]   ;;  %s1666_s6 = inlined_call_operand.vmem [shape: f32[1,32], index: 6, kind: input, shape index: {}]   ;;  %s1667_s7 = inlined_call_operand.vmem [shape: f32[1,32], index: 7, kind: input, shape index: {}]   ;;  %s1668_s8 = inlined_call_operand.vmem [shape: f32[1,32], index: 8, kind: input, shape index: {}]   ;;  %s1669_s9 = inlined_call_operand.hbm [shape: f32[2,8,32], index: 9, kind: output, shape index: {}]  }
   0x1   :  { %1670 = sst [smem:[#allocation16_spill]] %s1661_s1 }
   0x2   :  { %1671 = sst [smem:[#allocation17_spill]] %s1662_s2 }
   0x3   :  { %1672 = sst [smem:[#allocation18_spill]] %s1663_s3 }
   0x4   :  { %1673 = sst [smem:[#allocation19_spill]] %s1664_s4 }
   0x5   :  { %14 = vsyncpa [#allocation3], 0 }
   0x6   :  { %16 = vsyncpa [#allocation3 + $0x1], 0 }
   0x7   :  { %17 = vsyncpa [#allocation6], 0 }
   0x8   :  { %18 = vsyncpa [#allocation9], 0 }
   0x9   :  { %19 = vsyncpa [#allocation4], 0 }
   0xa   :  { %21 = vsyncpa [#allocation4 + $0x1], 0  ;;  %s1430_s30 = smov 0   ;;  %s1432_s10 = smov 0  }
   0xb   :  { %s1434_s11 = smov 0   ;;  %s1436_s12 = smov 0  }
   0xc LB: > { %s1674_s1 = sld [smem:[#allocation16_spill]]  ;;  %s1454_s16 = sadd.s32 4294967295, %s1366_s12   ;;  %s1366_s12 = sphi %s1436_s12, %s1689_s12   ;;  %s1362_s11 = sphi %s1434_s11, %s1688_s11   ;;  %s1358_s10 = sphi %s1432_s10, %s1687_s10   ;;  %s1354_s30 = sphi %s1430_s30, %s1686_s30  }
   0xd   : > { %p992_p0 = scmp.ge.s32.totalorder %s1366_s12, 1  ;;  %p48_p1 = scmp.eq.s32.totalorder %s1454_s16, 0 }
   0xe   : > { %p252_p2 = scmp.lt.s32.totalorder %s1366_s12, 3  ;;  %s1368_s18 = smov [#allocation5]  }
   0xf   : > { %s265_s19 = sshll.u32 %s1368_s18, 4  ;;  %s1676_s3 = sld [smem:[#allocation18_spill]]  ;;  %s266_s19 = int_to_ptr.vmem [resolvable:$true] %s265_s19 }
  0x10   : > { %p1459_p3 = pnand %p992_p0, %p252_p2  ;;  %s1678_s2 = sld [smem:[#allocation17_spill]] }
  0x11   : > { %s1369_s27 = smov [#allocation8]   ;;  %s1370_s29 = smov 128  }
  0x12   : > { %s263_s15 = sshll.u32 %s1674_s1, 4  ;;  %p1047_p4 = pneg %p1459_p3  ;;  %s264_s15 = int_to_ptr.hbm [resolvable:$true] %s263_s15 }
  0x13   : > { %s293_s28 = sshll.u32 %s1369_s27, 4  ;;  %s1371_s13 = smov 8   ;;  %s294_s28 = int_to_ptr.vmem [resolvable:$true] %s293_s28 }
  0x14   : > { %p1471_p6 = pnand %p1047_p4, %p48_p1  ;;  %s1679_s4 = sld [smem:[#allocation19_spill]] }
  0x15   : > { %s291_s22 = sshll.u32 %s1676_s3, 4  ;;  %s1372_s21 = smov [#allocation7]   ;;  %s292_s22 = int_to_ptr.hbm [resolvable:$true] %s291_s22 }
  0x16   : > { %s277_s26 = sshll.u32 %s1678_s2, 4  ;;  %s279_s24 = sshll.u32 %s1372_s21, 4  ;;  %s278_s26 = int_to_ptr.hbm [resolvable:$true] %s277_s26  ;;  %s280_s24 = int_to_ptr.vmem [resolvable:$true] %s279_s24 }
  0x17   : > { %1050 = dma.hbm_to_vmem [thread:$0]  (!%p1471_p6), %s264_s15, 512, %s266_s19, [#allocation6], %s1370_s29, %s1370_s29, %s1371_s13  }
  0x18   : > { %1056 = dma.hbm_to_vmem [thread:$0]  (!%p1471_p6), %s292_s22, 512, %s294_s28, [#allocation9], %s1370_s29, %s1370_s29, %s1371_s13  }
  0x19   : > { %1053 = dma.hbm_to_vmem [thread:$0]  (!%p1471_p6), %s278_s26, 512, %s280_s24, [#allocation6], %s1370_s29, %s1370_s29, %s1371_s13  }
  0x1a   : > { %s305_s20 = sshll.u32 %s1679_s4, 4  ;;  %s1373_s15 = smov [#allocation10]   ;;  %s306_s20 = int_to_ptr.hbm [resolvable:$true] %s305_s20 }
  0x1b   : > { %s307_s19 = sshll.u32 %s1373_s15, 4  ;;  %s991_s22 = sadd.s32 4294967294, %s1366_s12   ;;  %s308_s19 = int_to_ptr.vmem [resolvable:$true] %s307_s19 }
  0x1c   : > { %1059 = dma.hbm_to_vmem [thread:$0]  (!%p1471_p6), %s306_s20, 512, %s308_s19, [#allocation9], %s1370_s29, %s1370_s29, %s1371_s13  }
  0x1d   : > { %s1491_s25 = sadd.s32 1, %s1366_s12   ;;  %s34_s28 = sadd.s32 1, %s1362_s11 }
  0x1e   : > { %s31_s27 = ssub.s32 %s1366_s12, %s1491_s25  ;;  %p41_p8 = scmp.ne.s32.totalorder %s1362_s11, %s1358_s10 }
  0x1f   : > { %p32_p7 = scmp.eq.s32.totalorder %s31_s27, 0  ;;  %p42_p9 = scmp.eq.s32.totalorder %s1366_s12, 0 }
  0x20   : > { %p47_p10 = scmp.ne.s32.totalorder %s1358_s10, %s1354_s30  ;;  %p239_p13 = scmp.eq.s32.totalorder %s1454_s16, 1 }
  0x21   : > { %s1502_s26 = scalar_select %p32_p7, %s1362_s11, %s34_s28  }
  0x22   : > { %p1504_p11 = por %p42_p9, %p41_p8  ;;  %p1510_p12 = por %p48_p1, %p47_p10 }
  0x23   : > { %p245_p0 = scmp.eq.s32.totalorder %s991_s22, 1  ;;  %p1072_p2 = scmp.lt.s32.totalorder %s1366_s12, 2 }
  0x24   : > { %s333_s29 = sand.u32 1, %s1362_s11   ;;  %p1517_p4 = por %p239_p13, %p41_p8 }
  0x25   : > { %p1521_p6 = por %p245_p0, %p47_p10  ;;  %s998_s20 = sshll.u32 %s333_s29, 3 }
  0x26   : > { %s999_s21 = sshll.u32 %s1366_s12, 3  ;;  %s337_s27 = scalar_lea.vmem [#allocation2], %s998_s20 }
  0x27   : > { %s341_s19 = scalar_lea.hbm %s1660_s0, %s999_s21  ;;  %s345_s28 = sshll.u32 %s337_s27, 4  ;;  %s346_s28 = int_to_ptr.vmem [resolvable:$true] %s345_s28 }
  0x28   : > { %s343_s1 = sshll.u32 %s341_s19, 4  ;;  %p1531_p7 = pnand %p1072_p2, %p1504_p11  ;;  %s344_s1 = int_to_ptr.hbm [resolvable:$true] %s343_s1 }
  0x29   : > { %s334_s2 = scalar_lea.sflag [#allocation3], %s333_s29  ;;  %s1262_s3 = sshra.s32 %s344_s1, 4  ;;  %s1263_s3 = int_to_ptr.hbm [resolvable:$true] %s1262_s3 }
  0x2a   : > { %s1264_s4 = scalar_lea.hbm %s1263_s3, 8  ;;  %p1266_p9 = pneg %p1531_p7 }
  0x2b   : > { %p1265_p8 = scmp.ne.s32.totalorder %s1263_s3, %s1264_s4  ;;  %s1269_s24 = scalar_lea.hbm %s1660_s0, 16 }
  0x2c   : > { %p1270_p11 = scmp.lt.s32.totalorder %s1263_s3, %s1660_s0  ;;  %p1271_p0 = scmp.lt.s32.totalorder %s1269_s24, %s1264_s4 }
  0x2d   : > { %p1267_p10 = pnand %p1266_p9, %p1265_p8 }
  0x2e   : > { %p1272_p2 = por %p1271_p0, %p1270_p11 }
  0x2f   : > { %p1268_p13 = pneg %p1267_p10 }
  0x31   : > { %p1273_p5 = pnand %p1272_p2, %p1268_p13 }
  0x33   : > { %1276 = shalt.err (!%p1273_p5)
}
  0x34   : > { %1063 = dma.hbm_to_vmem [thread:$0]  (!%p1531_p7), %s344_s1, 128, %s346_s28, %s334_s2  }
  0x35   : > { %354 = sbr.rel (%p1459_p3) target bundleno = 1107 (0x453), region = 56  ;;  %s1548_s29 = sand.u32 (!%p1459_p3), 1, %s1358_s10  }
  0x36   : > { %s1001_s19 = sshll.u32 (!%p1459_p3), %s1548_s29, 3  ;;  %s357_s27 = scalar_lea.sflag (!%p1459_p3), [#allocation3], %s1548_s29 }
  0x37   : > { %s360_s3 = scalar_lea.vmem (!%p1459_p3), [#allocation2], %s1001_s19 }
  0x3a   : > { %1337 = dma.done.wait (%p1510_p12), %s357_s27, 128  }
  0x3b   : > { %1339 = vsyncadd (%p1510_p12), %s357_s27, 4294967168 }
  0x3c   : > { %1341 = dma.done.wait (%p48_p1), [#allocation6], 1024  }
  0x3d   : > { %1343 = vsyncadd (%p48_p1), [#allocation6], 4294966272 }
  0x3e   : > { %1345 = dma.done.wait (%p48_p1), [#allocation9], 1024  }
  0x3f   : > { %1347 = vsyncadd (%p48_p1), [#allocation9], 4294966272  ;;  %v452_v0 = vld [vmem:[#allocation7 + $0x18] sm:$0xff]  ;;  %v451_v1 = vld [vmem:[#allocation7 + $0x10] sm:$0xff]  ;;  %vm425_vm0 = vcmask 261120   ;;  %vm505_vm1 = vcmask 64512  }
  0x40   : > { %v420_v2 = vld [vmem:[#allocation5 + $0x18] sm:$0xff]  ;;  %469 = vmatpush.msra.mxu1 %v452_v0  ;;  %v419_v3 = vld [vmem:[#allocation5 + $0x10] sm:$0xff]  ;;  %v450_v4 = vld [vmem:[#allocation7 + $0x8] sm:$0xff]  ;;  %s1374_s23 = smov 104   ;;  %s1375_s28 = smov 120  }
  0x41   : > { %441 = vmatpush.msra.mxu0 %v420_v2  ;;  %v418_v5 = vld [vmem:[#allocation5 + $0x8] sm:$0xff]  ;;  %v449_v6 = vld [vmem:[#allocation7] sm:$0xff]  ;;  %v416_v8 = vld [vmem:[%s360_s3] sm:$0xff]  ;;  %s1376_s22 = smov 112   ;;  %s1377_s24 = smov 8  }
  0x42   : > { %470 = vmatpush.msra.mxu1 %v451_v1  ;;  %v417_v7 = vld [vmem:[#allocation5] sm:$0xff]  ;;  %v1122_v9 = vld [vmem:[%s1666_s6] ss:$0 sm:$0xff]  ;;  %v480_v15 = vld [vmem:[#allocation8 + $0x18] sm:$0xff]  ;;  %s1378_s15 = smov 16   ;;  %s1379_s14 = smov 24  }
  0x43   : > { %442 = vmatpush.msra.mxu0 %v419_v3  ;;  %v1123_v10 = vld [vmem:[%s1665_s5] ss:$0 sm:$0xff]  ;;  %497 = vmatpush.msra.mxu2 %v480_v15  ;;  %v478_v17 = vld [vmem:[#allocation8 + $0x8] sm:$0xff]  ;;  %v477_v18 = vld [vmem:[#allocation8] sm:$0xff]  ;;  %s1024_s27 = sshll.u32 %s1454_s16, 3  ;;  %s868_s16 = scalar_lea.sflag [#allocation4], %s1548_s29 }
  0x44   : > { %471 = vmatpush.msra.mxu1 %v450_v4  ;;  %v479_v16 = vld [vmem:[#allocation8 + $0x10] sm:$0xff]  ;;  %s878_s2 = scalar_lea.hbm %s1669_s9, %s1024_s27 }
  0x45   : > { %443 = vmatpush.msra.mxu0 %v418_v5  ;;  %498 = vmatpush.msra.mxu2 %v479_v16  ;;  %v1124_v28 = vld [vmem:[%s1667_s7] ss:$0 sm:$0xff] }
  0x46   : > { %472 = vmatpush.msra.mxu1 %v449_v6 }
  0x47   : > { %444 = vmatpush.msra.mxu0 %v417_v7  ;;  %1008 = vmatmul.msk.f32.vlgmr.msra.gmra.mxu1 %vm425_vm0, %v416_v8 }
  0x48   : > { %1007 = vmatmul.msk.f32.vlgmr.msra.gmra.mxu0 %vm425_vm0, %v416_v8  ;;  %499 = vmatpush.msra.mxu2 %v478_v17 }
  0x4a   : > { %500 = vmatpush.msra.mxu2 %v477_v18 }
  0x4b   : > { %1009 = vmatmul.msk.f32.vlgmr.msra.gmra.mxu2 %vm425_vm0, %v416_v8 }
  0xc4   : > { %v474_v11 = vpop.f32.mrf.mxu1 }
  0xc5   : > { %v446_v12 = vpop.f32.mrf.mxu0  ;;  %v475_v13 = vadd.f32 %v1122_v9, %v474_v11 }
  0xc6   : > { %v447_v14 = vadd.f32 %v1123_v10, %v446_v12 }
  0xc7   : > { %741 = vrot.lane.b32.xlu2 %v475_v13, %s1374_s23  ;;  %582 = vrot.lane.b32.xlu1 %v475_v13, %s1375_s28 }
  0xc8   : > { %662 = vrot.lane.b32.xlu0 %v475_v13, %s1376_s22  ;;  %1010 = vmatpush.xpose.msk.msra.mxu3 %vm505_vm1, %v475_v13 }
  0xcb   : > { %1011 = vmatmul.msk.f32.vlgmr.msra.gmra.mxu3 %vm505_vm1, %v447_v14 }
  0xce   : > { %v502_v29 = vpop.f32.mrf.mxu2 }
  0xcf   : > { %739 = vrot.lane.b32.xlu2 %v447_v14, %s1374_s23  ;;  %580 = vrot.lane.b32.xlu1 %v447_v14, %s1375_s28  ;;  %v503_v30 = vadd.f32 %v1124_v28, %v502_v29 }
  0xd0   : > { %660 = vrot.lane.b32.xlu0 %v447_v14, %s1376_s22 }
  0xd1   : > { %575 = vmatpush.msrb.mxu3 %v503_v30 }
 0x121   : > { %v742_v20 = vpop.permute.xlu2 %741 }
 0x129   : > { %v740_v24 = vpop.permute.xlu2 %739 }
 0x139   : > { %v583_v19 = vpop.permute.xlu1 %582 }
 0x13a   : > { %v663_v21 = vpop.permute.xlu0 %662  ;;  %1013 = vmatpush.xpose.msk.msrb.mxu0 %vm505_vm1, %v583_v19 }
 0x13b   : > { %1016 = vmatpush.xpose.msk.msrb.mxu2 %vm505_vm1, %v663_v21 }
 0x13e   : > { %1019 = vmatpush.xpose.msk.msra.mxu0 %vm505_vm1, %v742_v20 }
 0x141   : > { %v581_v22 = vpop.permute.xlu1 %580 }
 0x142   : > { %v661_v23 = vpop.permute.xlu0 %660  ;;  %1014 = vmatmul.msk.f32.vlgmr.msrb.gmra.mxu0 %vm505_vm1, %v581_v22 }
 0x143   : > { %1017 = vmatmul.msk.f32.vlgmr.msrb.gmra.mxu2 %vm505_vm1, %v661_v23 }
 0x14a   : > { %1020 = vmatmul.msk.f32.vlgmr.msra.gmra.mxu0 %vm505_vm1, %v740_v24 }
 0x14e   : > { %v529_v25 = vpop.f32.mrf.mxu3 }
 0x14f   : > { %v532_v26 = vmul.f32 0.35355338, %v529_v25 }
 0x151   : > { %v533_v27 = vsel %vm505_vm1, %v532_v26, -inf }
 0x152   : > { %534 = vmax.xlane.f32.xlu0 %v533_v27 }
 0x1bf   : > { %v605_v31 = vpop.f32.mrf.mxu0 }
 0x1c0   : > { %v608_v32 = vmul.f32 0.35355338, %v605_v31 }
 0x1c2   : > { %v609_v33 = vsel %vm505_vm1, %v608_v32, -inf }
 0x1c3   : > { %610 = vmax.xlane.f32.xlu1 %v609_v33 }
 0x1c5   : > { %v535_v34 = vpop.xlane.xlu0 %534 }
 0x1c6   : > { %v536_v35 = vsub.f32 %v532_v26, %v535_v34  ;;  %v685_v36 = vpop.f32.mrf.mxu2 }
 0x1c7   : > { %v688_v37 = vmul.f32 0.35355338, %v685_v36  ;;  %v764_v40 = vpop.f32.mrf.mxu0 }
 0x1c8   : > { %v537_v38 = vmul.f32 1.442695, %v536_v35  ;;  %v767_v41 = vmul.f32 0.35355338, %v764_v40 }
 0x1c9   : > { %v689_v39 = vsel %vm505_vm1, %v688_v37, -inf }
 0x1ca   : > { %1126 = vpow2.f32 %v537_v38  ;;  %690 = vmax.xlane.f32.xlu2 %v689_v39  ;;  %v768_v43 = vsel %vm505_vm1, %v767_v41, -inf }
 0x1d0   : > { %v1127_v42 = vpop.eup %1126 }
 0x1d1   : > { %v539_v44 = vsel %vm505_vm1, %v1127_v42, 0.0 }
 0x1d2   : > { %769 = vmax.xlane.f32.xlu2 %v768_v43  ;;  %540 = vadd.xlane.f32.xlu0 %v539_v44 }
 0x236   : > { %v611_v45 = vpop.xlane.xlu1 %610 }
 0x237   : > { %v612_v46 = vsub.f32 %v608_v32, %v611_v45 }
 0x239   : > { %v613_v47 = vmul.f32 1.442695, %v612_v46 }
 0x23b   : > { %1128 = vpow2.f32 %v613_v47 }
 0x23d   : > { %v691_v48 = vpop.xlane.xlu2 %690 }
 0x23e   : > { %v692_v49 = vsub.f32 %v688_v37, %v691_v48 }
 0x240   : > { %v693_v50 = vmul.f32 1.442695, %v692_v49 }
 0x241   : > { %v1597_v51 = vpop.eup %1128 }
 0x242   : > { %1130 = vpow2.f32 %v693_v50  ;;  %v615_v52 = vsel %vm505_vm1, %v1597_v51, 0.0 }
 0x243   : > { %616 = vadd.xlane.f32.xlu1 %v615_v52  ;;  %v837_v52 = vld [vmem:[#allocation10 + $0x10] sm:$0xff] }
 0x245   : > { %v770_v53 = vpop.xlane.xlu2 %769  ;;  %v541_v54 = vpop.xlane.xlu0 %540 }
 0x246   : > { %v771_v55 = vsub.f32 %v767_v41, %v770_v53  ;;  %1132 = vrcp.f32 %v541_v54  ;;  %v553_v63 = vand.u32 2147483648, %v541_v54  ;;  %v551_v1 = vand.u32 2147483647, %v541_v54  ;;  %v836_v53 = vld [vmem:[#allocation10 + $0x8] sm:$0xff] }
 0x247   : > { %vm547_vm3 = vweird.f32 %v541_v54 }
 0x248   : > { %v1601_v56 = vpop.eup %1130  ;;  %v772_v57 = vmul.f32 1.442695, %v771_v55  ;;  %v554_v4 = vor.u32 1.1754944e-38, %v553_v63  ;;  %vm552_vm5 = vcmp.eq.f32.partialorder %v551_v1, 8.507059e+37 }
 0x249   : > { %v695_v58 = vsel %vm505_vm1, %v1601_v56, 0.0 }
 0x24a   : > { %1134 = vpow2.f32 %v772_v57  ;;  %696 = vadd.xlane.f32.xlu2 %v695_v58 }
 0x24c   : > { %v1133_v59 = vpop.eup %1132 }
 0x24d   : > { %v543_v60 = vmul.f32 %v1133_v59, %v541_v54  ;;  %vm548_vm2 = vweird.f32 %v1133_v59  ;;  %v835_v54 = vld [vmem:[#allocation10] sm:$0xff] }
 0x24e   : > { %vm549_vm4 = vmor %vm547_vm3, %vm548_vm2 }
 0x24f   : > { %v544_v61 = vsub.f32 1.0, %v543_v60 }
 0x250   : > { %v1605_v62 = vpop.eup %1134 }
 0x251   : > { %v545_v0 = vmul.f32 %v1133_v59, %v544_v61  ;;  %v774_v2 = vsel %vm505_vm1, %v1605_v62, 0.0  ;;  %v1125_v61 = vld [vmem:[%s1668_s8] ss:$0 sm:$0xff] }
 0x252   : > { %775 = vadd.xlane.f32.xlu0 %v774_v2 }
 0x253   : > { %v546_v3 = vadd.f32 %v1133_v59, %v545_v0 }
 0x255   : > { %v550_v5 = vsel %vm549_vm4, %v1133_v59, %v546_v3  ;;  %vm831_vm4 = vcmask 130048  }
 0x256   : > { %v555_v6 = vsel %vm552_vm5, %v554_v4, %v550_v5  ;;  %vm833_vm5 = vcmask 195584  }
 0x257   : > { %v556_v7 = vmul.f32 %v1127_v42, %v555_v6 }
 0x259   : > { %1012 = vmatmul.msk.f32.vlgmr.msrb.gmra.mxu3 %vm505_vm1, %v556_v7 }
 0x25c   : > { %634 = vrot.lane.b32.xlu1 %v503_v30, %s1375_s28 }
 0x262   : > { %713 = vrot.lane.b32.xlu2 %v503_v30, %s1376_s22  ;;  %s882_s22 = sshll.u32 %s878_s2, 4  ;;  %s883_s22 = int_to_ptr.hbm [resolvable:$true] %s882_s22 }
 0x263   : > { %s1306_s20 = sshra.s32 %s883_s22, 4  ;;  %s1307_s20 = int_to_ptr.hbm [resolvable:$true] %s1306_s20 }
 0x264   : > { %s1308_s21 = scalar_lea.hbm %s1307_s20, 8  ;;  %p1313_p12 = scmp.lt.s32.totalorder %s1307_s20, %s1669_s9 }
 0x265   : > { %p1309_p1 = scmp.ne.s32.totalorder %s1307_s20, %s1308_s21 }
 0x266   : > { %792 = vrot.lane.b32.xlu0 %v503_v30, %s1374_s23  ;;  %s415_s23 = scalar_lea.vmem [#allocation11], %s1001_s19  ;;  %s1312_s19 = scalar_lea.hbm %s1669_s9, 16 }
 0x267   : > { %s880_s28 = sshll.u32 %s415_s23, 4  ;;  %p1310_p3 = pnand %p1309_p1, %p1517_p4  ;;  %s881_s28 = int_to_ptr.vmem [resolvable:$true] %s880_s28 }
 0x268   : > { %p1314_p7 = scmp.lt.s32.totalorder %s1312_s19, %s1308_s21 }
 0x269   : > { %p1311_p5 = pneg %p1310_p3 }
 0x26a   : > { %p1315_p8 = por %p1314_p7, %p1313_p12 }
 0x26c   : > { %p1316_p9 = pnand %p1315_p8, %p1311_p5 }
 0x2b6   : > { %v617_v8 = vpop.xlane.xlu1 %616 }
 0x2b7   : > { %1136 = vrcp.f32 %v617_v8  ;;  %v629_v16 = vand.u32 2147483648, %v617_v8  ;;  %vm623_vm7 = vweird.f32 %v617_v8  ;;  %v627_v20 = vand.u32 2147483647, %v617_v8 }
 0x2b9   : > { %v630_v24 = vor.u32 1.1754944e-38, %v629_v16  ;;  %vm628_vm10 = vcmp.eq.f32.partialorder %v627_v20, 8.507059e+37 }
 0x2bd   : > { %v1137_v9 = vpop.eup %1136  ;;  %v697_v10 = vpop.xlane.xlu2 %696 }
 0x2be   : > { %v619_v11 = vmul.f32 %v1137_v9, %v617_v8  ;;  %1138 = vrcp.f32 %v697_v10  ;;  %vm624_vm6 = vweird.f32 %v1137_v9  ;;  %v709_v22 = vand.u32 2147483648, %v697_v10 }
 0x2bf   : > { %vm625_vm8 = vmor %vm623_vm7, %vm624_vm6  ;;  %v707_v26 = vand.u32 2147483647, %v697_v10  ;;  %vm703_vm11 = vweird.f32 %v697_v10 }
 0x2c0   : > { %v620_v12 = vsub.f32 1.0, %v619_v11  ;;  %v710_v30 = vor.u32 1.1754944e-38, %v709_v22 }
 0x2c1   : > { %vm708_vm13 = vcmp.eq.f32.partialorder %v707_v26, 8.507059e+37 }
 0x2c2   : > { %v621_v13 = vmul.f32 %v1137_v9, %v620_v12 }
 0x2c4   : > { %v1139_v14 = vpop.eup %1138  ;;  %v622_v15 = vadd.f32 %v1137_v9, %v621_v13 }
 0x2c5   : > { %v699_v17 = vmul.f32 %v1139_v14, %v697_v10  ;;  %v714_v18 = vpop.permute.xlu2 %713  ;;  %v776_v19 = vpop.xlane.xlu0 %775  ;;  %vm704_vm9 = vweird.f32 %v1139_v14 }
 0x2c6   : > { %1140 = vrcp.f32 %v776_v19  ;;  %734 = vmatpush.msra.mxu3 %v714_v18  ;;  %v626_v23 = vsel %vm625_vm8, %v1137_v9, %v622_v15  ;;  %vm705_vm12 = vmor %vm703_vm11, %vm704_vm9  ;;  %v788_v38 = vand.u32 2147483648, %v776_v19  ;;  %v786_v40 = vand.u32 2147483647, %v776_v19 }
 0x2c7   : > { %v700_v21 = vsub.f32 1.0, %v699_v17  ;;  %v631_v28 = vsel %vm628_vm10, %v630_v24, %v626_v23  ;;  %vm782_vm15 = vweird.f32 %v776_v19 }
 0x2c8   : > { %v632_v35 = vmul.f32 %v1597_v51, %v631_v28  ;;  %v789_v42 = vor.u32 1.1754944e-38, %v788_v38  ;;  %vm787_vm3 = vcmp.eq.f32.partialorder %v786_v40, 8.507059e+37  ;;  %v838_v51 = vld [vmem:[#allocation10 + $0x18] sm:$0xff] }
 0x2c9   : > { %v701_v25 = vmul.f32 %v1139_v14, %v700_v21  ;;  %858 = vmatpush.msra.mxu2 %v838_v51 }
 0x2cb   : > { %v702_v27 = vadd.f32 %v1139_v14, %v701_v25  ;;  %859 = vmatpush.msra.mxu2 %v837_v52 }
 0x2cc   : > { %v1141_v29 = vpop.eup %1140 }
 0x2cd   : > { %v706_v31 = vsel %vm705_vm12, %v1139_v14, %v702_v27  ;;  %v778_v32 = vmul.f32 %v1141_v29, %v776_v19  ;;  %vm783_vm14 = vweird.f32 %v1141_v29  ;;  %860 = vmatpush.msra.mxu2 %v836_v53 }
 0x2ce   : > { %v711_v33 = vsel %vm708_vm13, %v710_v30, %v706_v31  ;;  %v635_v34 = vpop.permute.xlu1 %634  ;;  %vm784_vm2 = vmor %vm782_vm15, %vm783_vm14 }
 0x2cf   : > { %v779_v36 = vsub.f32 1.0, %v778_v32  ;;  %655 = vmatpush.msrb.mxu1 %v635_v34  ;;  %v712_v37 = vmul.f32 %v1601_v56, %v711_v33  ;;  %861 = vmatpush.msra.mxu2 %v835_v54 }
 0x2d0   : > { %1015 = vmatmul.msk.f32.vlgmr.msrb.gmra.mxu1 %vm505_vm1, %v632_v35 }
 0x2d1   : > { %v780_v39 = vmul.f32 %v1141_v29, %v779_v36  ;;  %1018 = vmatmul.msk.f32.vlgmr.msra.gmra.mxu3 %vm505_vm1, %v712_v37 }
 0x2d3   : > { %v781_v41 = vadd.f32 %v1141_v29, %v780_v39 }
 0x2d5   : > { %v785_v43 = vsel %vm784_vm2, %v1141_v29, %v781_v41 }
 0x2d6   : > { %v790_v44 = vsel %vm787_vm3, %v789_v42, %v785_v43 }
 0x2d7   : > { %v791_v45 = vmul.f32 %v1605_v62, %v790_v44 }
 0x2d8   : > { %v793_v46 = vpop.permute.xlu0 %792 }
 0x2d9   : > { %813 = vmatpush.msra.mxu1 %v793_v46 }
 0x2da   : > { %1021 = vmatmul.msk.f32.vlgmr.msra.gmra.mxu1 %vm505_vm1, %v791_v45 }
 0x2dc   : > { %v577_v47 = vpop.f32.mrf.mxu3 }
 0x34d   : > { %v657_v48 = vpop.f32.mrf.mxu1 }
 0x34e   : > { %819 = vrot.lane.b32.xlu1 %v657_v48, %s1377_s24 }
 0x354   : > { %v736_v49 = vpop.f32.mrf.mxu3 }
 0x355   : > { %823 = vrot.lane.b32.xlu0 %v736_v49, %s1378_s15 }
 0x357   : > { %v815_v50 = vpop.f32.mrf.mxu1 }
 0x358   : > { %827 = vrot.lane.b32.xlu2 %v815_v50, %s1379_s14 }
 0x3b2   : > { %v828_v58 = vpop.permute.xlu2 %827 }
 0x3c0   : > { %v820_v55 = vpop.permute.xlu1 %819 }
 0x3c1   : > { %v830_v56 = vsel %vm505_vm1, %v577_v47, %v820_v55 }
 0x3c7   : > { %v824_v57 = vpop.permute.xlu0 %823 }
 0x3c8   : > { %v832_v59 = vsel %vm831_vm4, %v830_v56, %v824_v57 }
 0x3c9   : > { %v834_v60 = vsel %vm833_vm5, %v832_v59, %v828_v58 }
 0x3ca   : > { %1022 = vmatmul.msk.f32.vlgmr.msra.gmra.mxu2 %vm425_vm0, %v834_v60 }
 0x44d   : > { %v863_v62 = vpop.f32.mrf.mxu2 }
 0x44e   : > { %v864_v63 = vadd.f32 %v1125_v61, %v863_v62 }
 0x450   : > { %866 = vst.msk [vmem:[%s415_s23] sm:$0xff] %vm425_vm0, %v864_v63 }
 0x451   : > { %1319 = shalt.err (!%p1316_p9)
}
 0x452   : > { %1045 = dma.vmem_to_hbm [thread:$0]  (%p1517_p4), %s881_s28, 128, %s883_s22, %s868_s16  }
 0x453 PF: > { %s894_s29 = sand.u32 1, %s1354_s30   ;;  %p1685_p10 = scmp.ge.s32.totalorder %s1366_s12, 2 }
 0x454   : > { %s895_s3 = scalar_lea.sflag [#allocation4], %s894_s29 }
 0x455   : > { %p1065_p13 = pnand %p1685_p10, %p1521_p6 }
 0x457   : > { %p1066_p11 = pneg %p1065_p13 }
 0x459   : > { %1349 = dma.done.wait (%p1066_p11), %s895_s3, 128  }
 0x45a   : > { %1351 = vsyncadd (%p1066_p11), %s895_s3, 4294967168  ;;  %p24_p0 = scmp.ge.s32.totalorder %s1491_s25, 4   ;;  %s1686_s30 = smov %s1358_s10 }
 0x45b   : > { %s1687_s10 = smov %s1362_s11  ;;  %s1688_s11 = smov %s1502_s26 }
 0x45c   : > { %s1689_s12 = smov %s1491_s25  ;;  %26 = sbr.rel (!%p24_p0) target bundleno = 12 (0xc), region = 117 }
 0x461   :  { %901 = vsyncpa [#allocation3], 1 }
 0x462   :  { %903 = vsyncpa [#allocation3 + $0x1], 1 }
 0x463   :  { %904 = vsyncpa [#allocation6], 1 }
 0x464   :  { %905 = vsyncpa [#allocation9], 1 }
 0x465   :  { %906 = vsyncpa [#allocation4], 1 }
 0x466   :  { %908 = vsyncpa [#allocation4 + $0x1], 1 }

</bundles_post_ra>
